<compile_context>
chip_gen: v6e
topology: v6e:2x2x1
jax: 0.10.0
libtpu: 0.0.40
codegen_flags: <defaults>
</compile_context>

<pallas_src>
import numpy as np
import jax
import jax.numpy as jnp
from jax.experimental import pallas as pl
from jax.experimental.pallas import tpu as pltpu

# ---------------- problem sizes ----------------
N = 512          # samples per call (multiple of TN)
TN = 128         # samples per grid step = one full lane width
F = 16           # features
T, D = 8, 3      # trees, depth (oblivious / symmetric trees)
L = 2 ** D       # leaves per tree
C = 4            # classes

# ------------- padded, layout-friendly sizes -------------
FP = 32          # rows of x^T: F features + 1 bias row + zero pad
TDP = 32         # (tree, level) rows, padded from T*D = 24
TLP = T * L      # 64 leaf rows (already aligned)
CP = 16          # class rows, padded from C = 4 (one bf16 sublane group)
PR = TDP + TLP + CP   # 112 rows in the packed parameter slab
BIAS_ROW = F     # index of the constant-1 row appended to x^T


def rf_predict_kernel(xt_ref, par_ref, out_ref):
    # xt_ref : (FP, TN)  bf16 : x^T tile with a bias row of ones (rows > F zero)
    # par_ref: (PR, TLP) bf16 : packed [selector | leaf-pattern | votes] slab
    xt = xt_ref[...]

    w = par_ref[0:TDP, 0:FP]            # (TDP, FP)  one-hot feature selector, col F = -threshold
    p = par_ref[TDP:TDP + TLP, 0:TDP]   # (TLP, TDP) +/-1 leaf sign pattern (0 cross-tree / pad)
    v = par_ref[TDP + TLP:PR, 0:TLP]    # (CP, TLP)  leaf -> class votes (rows >= C are zero)

    # 1) gather split feature AND subtract threshold in one bf16 MXU pass
    sel = jnp.dot(w, xt, preferred_element_type=jnp.float32)            # (TDP, TN)

    # 2) signed split decisions (+1 / -1); compare in f32 (no bf16 VALU on v5e)
    #    NOTE: synthetic forest routes on strict `>`; sklearn routes on `<=`.
    bits = jnp.where(sel > 0.0, 1.0, -1.0).astype(jnp.bfloat16)         # (TDP, TN)

    # 3) leaf one-hot per tree: pattern row (t,l) . signed bits == D iff every
    #    bit of leaf l matches the sample's path.  match is an integer <= D,
    #    so max(match - (D-1), 0) is exactly the one-hot.
    match = jnp.dot(p, bits, preferred_element_type=jnp.float32)        # (TLP, TN)
    onehot = jnp.maximum(match - (D - 1.0), 0.0).astype(jnp.bfloat16)   # (TLP, TN) in {0,1}

    # 4) accumulate class votes of the selected leaf of every tree
    scores = jnp.dot(v, onehot, preferred_element_type=jnp.float32)     # (CP, TN)

    # 5) argmax over classes, first index on ties (matching np.argmax).
    #    Padded class rows (>= C) are exactly 0 and real scores are >= 0, so a
    #    padded row can only tie the max when class 0 also does -> min picks 0.
    maxv = jnp.max(scores, axis=0, keepdims=True)                       # (1, TN)
    cls = jax.lax.broadcasted_iota(jnp.int32, scores.shape, 0)          # (CP, TN)
    pred = jnp.min(jnp.where(scores == maxv, cls, CP),
                   axis=0, keepdims=True)                               # (1, TN)
    out_ref[...] = pred.astype(jnp.int32)                               # lane-dense


def rf_predict(x, param_slab):
    """x: (n, F) float32 on the bf16 grid. Returns (n,) int32 class labels."""
    n = x.shape[0]
    assert n % TN == 0, "batch must be a multiple of the 128-lane tile"

    # Layout plumbing (outside the kernel): samples on the lane axis plus a
    # bias row of ones for the folded thresholds; exact bf16 cast.
    xt = jnp.zeros((FP, n), jnp.float32)
    xt = xt.at[0:F, :].set(x.T)
    xt = xt.at[BIAS_ROW, :].set(1.0)
    xt = xt.astype(jnp.bfloat16)

    preds = pl.pallas_call(
        rf_predict_kernel,
        out_shape=jax.ShapeDtypeStruct((1, n), jnp.int32),
        grid=(n // TN,),
        in_specs=[
            pl.BlockSpec((FP, TN), lambda i: (0, i)),    # x^T tile (lane-dense)
            pl.BlockSpec((PR, TLP), lambda i: (0, 0)),   # parameter slab (resident)
        ],
        out_specs=pl.BlockSpec((1, TN), lambda i: (0, i)),
        compiler_params=pltpu.CompilerParams(
            dimension_semantics=("parallel",)),          # shard batch across TCs (v7x)
    )(xt, param_slab)
    return preds[0]


def rf_predict_reference(x, feat_idx, thresholds, votes):
    """Pure-JAX reference with direct feature gather + per-tree leaf lookup."""
    n = x.shape[0]
    xf = x[:, feat_idx.reshape(-1)].reshape(n, T, D)                    # (N, T, D)
    bits = (xf > thresholds[None, :, :]).astype(jnp.int32)              # (N, T, D)
    pow2 = (2 ** jnp.arange(D)).astype(jnp.int32)                       # (D,)
    leaf = jnp.sum(bits * pow2[None, None, :], axis=-1)                 # (N, T)
    leaf_flat = leaf + (jnp.arange(T) * L)[None, :]                     # (N, T)
    scores = jnp.sum(votes[leaf_flat], axis=1)                          # (N, C)
    return jnp.argmax(scores, axis=-1).astype(jnp.int32)


def make_params(key):
    k_feat, k_thr, k_votes = jax.random.split(key, 3)

    # split feature index + threshold for every (tree, level)
    feat_idx = jax.random.randint(k_feat, (T, D), 0, F)                 # (T, D) int32
    thresholds = jax.random.normal(k_thr, (T, D), dtype=jnp.float32)
    # quantize thresholds to the bf16 grid so the folded -thr column is exact
    thresholds = thresholds.astype(jnp.bfloat16).astype(jnp.float32)    # (T, D)

    # per-leaf class votes, quantized to multiples of 1/64: exact in bf16 and
    # exactly accumulated in f32 -> deterministic, bit-identical tie-breaks.
    votes = jnp.round(
        jax.random.uniform(k_votes, (T * L, C), dtype=jnp.float32) * 64.0) / 64.0

    feat_np = np.asarray(feat_idx)
    thr_np = np.asarray(thresholds)
    votes_np = np.asarray(votes)

    # --- selector with folded thresholds: row (t,d) = one-hot(feat) , col F = -thr ---
    W = np.zeros((TDP, FP), np.float32)
    for t in range(T):
        for d in range(D):
            r = t * D + d
            W[r, feat_np[t, d]] = 1.0
            W[r, BIAS_ROW] = -thr_np[t, d]

    # --- +/-1 leaf sign pattern (0 for cross-tree columns and padding) ---
    P = np.zeros((TLP, TDP), np.float32)
    for t in range(T):
        for l in range(L):
            for d in range(D):
                P[t * L + l, t * D + d] = 1.0 if ((l >> d) & 1) else -1.0

    # --- leaf -> class votes, transposed, padded class rows are zero ---
    V = np.zeros((CP, TLP), np.float32)
    V[:C, :] = votes_np.T

    # --- pack everything into a single bf16 slab (one input DMA) ---
    slab = np.zeros((PR, TLP), np.float32)
    slab[0:TDP, 0:FP] = W
    slab[TDP:TDP + TLP, 0:TDP] = P
    slab[TDP + TLP:PR, 0:TLP] = V
    param_slab = jnp.asarray(slab, dtype=jnp.bfloat16)   # all entries bf16-exact

    raw_params = (feat_idx, thresholds, votes)
    return param_slab, raw_params


if __name__ == "__main__":
    # TODO(synk): sklearn's RandomForestClassifier.fit (in MLWrapper.fit) has no
    # Pallas equivalent; the forest parameters here are synthetic/deterministic.
    key = jax.random.PRNGKey(0)
    k_x, k_p = jax.random.split(key)

    # quantize x to the bf16 grid so the bf16 MXU feature gather is bit-exact
    x = jax.random.normal(k_x, (N, F), dtype=jnp.float32)
    x = x.astype(jnp.bfloat16).astype(jnp.float32)

    param_slab, raw_params = make_params(k_p)

    preds = jax.block_until_ready(rf_predict(x, param_slab))
    ref = jax.block_until_ready(rf_predict_reference(x, *raw_params))

    assert preds.shape == (N,)
    assert bool(jnp.all(preds == ref)), (preds, ref)

    print("KERNEL_OK")
</pallas_src>

<mosaic_0001>
module attributes {stable_mosaic.version = 11 : i64} {
  func.func @rf_predict_kernel(%arg0: i32, %arg1: memref<32x128xbf16, #tpu.memory_space<vmem>>, %arg2: memref<112x64xbf16, #tpu.memory_space<vmem>>, %arg3: memref<1x128xi32, #tpu.memory_space<vmem>>) attributes {dimension_semantics = [#tpu.dimension_semantics<parallel>], iteration_bounds = array<i64: 4>, scalar_prefetch = 0 : i64, scratch_operands = 0 : i64, tpu.core_type = #tpu.core_type<tc>, window_params = [{transform_indices = @transform_0, window_bounds = array<i64: 32, 128>}, {pipeline_mode = #tpu.pipeline_mode<synchronous>, transform_indices = @transform_1, window_bounds = array<i64: 112, 64>}, {transform_indices = @transform_2, window_bounds = array<i64: 1, 128>}]} {
    %c0 = arith.constant 0 : index
    %c0_0 = arith.constant 0 : index
    %0 = vector.load %arg1[%c0, %c0_0] : memref<32x128xbf16, #tpu.memory_space<vmem>>, vector<32x128xbf16>
    %c0_1 = arith.constant 0 : index
    %c0_2 = arith.constant 0 : index
    %1 = vector.load %arg2[%c0_1, %c0_2] : memref<112x64xbf16, #tpu.memory_space<vmem>>, vector<32x32xbf16>
    %c32 = arith.constant 32 : index
    %c0_3 = arith.constant 0 : index
    %2 = vector.load %arg2[%c32, %c0_3] : memref<112x64xbf16, #tpu.memory_space<vmem>>, vector<64x32xbf16>
    %c96 = arith.constant 96 : index
    %c0_4 = arith.constant 0 : index
    %3 = vector.load %arg2[%c96, %c0_4] : memref<112x64xbf16, #tpu.memory_space<vmem>>, vector<16x64xbf16>
    %cst = arith.constant dense<0.000000e+00> : vector<32x128xf32>
    %4 = tpu.matmul %1, %0, %cst {dimension_numbers = #tpu.dot_dimension_numbers<[1], [0], [0], [1], [0, 0, 1, 1], [], []>} : vector<32x32xbf16>, vector<32x128xbf16>, vector<32x128xf32> -> vector<32x128xf32>
    %cst_5 = arith.constant 0.000000e+00 : f32
    %5 = vector.broadcast %cst_5 : f32 to vector<32x128xf32>
    %6 = arith.cmpf ogt, %4, %5 : vector<32x128xf32>
    %cst_6 = arith.constant 1.000000e+00 : f32
    %cst_7 = arith.constant -1.000000e+00 : f32
    %7 = vector.broadcast %cst_6 : f32 to vector<32x128xf32>
    %8 = vector.broadcast %cst_7 : f32 to vector<32x128xf32>
    %9 = arith.select %6, %7, %8 : vector<32x128xi1>, vector<32x128xf32>
    %10 = arith.truncf %9 : vector<32x128xf32> to vector<32x128xbf16>
    %cst_8 = arith.constant dense<0.000000e+00> : vector<64x128xf32>
    %11 = tpu.matmul %2, %10, %cst_8 {dimension_numbers = #tpu.dot_dimension_numbers<[1], [0], [0], [1], [0, 0, 1, 1], [], []>} : vector<64x32xbf16>, vector<32x128xbf16>, vector<64x128xf32> -> vector<64x128xf32>
    %cst_9 = arith.constant 2.000000e+00 : f32
    %12 = vector.broadcast %cst_9 : f32 to vector<64x128xf32>
    %13 = arith.subf %11, %12 : vector<64x128xf32>
    %cst_10 = arith.constant 0.000000e+00 : f32
    %14 = vector.broadcast %cst_10 : f32 to vector<64x128xf32>
    %15 = arith.maximumf %13, %14 : vector<64x128xf32>
    %16 = arith.truncf %15 : vector<64x128xf32> to vector<64x128xbf16>
    %cst_11 = arith.constant dense<0.000000e+00> : vector<16x128xf32>
    %17 = tpu.matmul %3, %16, %cst_11 {dimension_numbers = #tpu.dot_dimension_numbers<[1], [0], [0], [1], [0, 0, 1, 1], [], []>} : vector<16x64xbf16>, vector<64x128xbf16>, vector<16x128xf32> -> vector<16x128xf32>
    %cst_12 = arith.constant dense<0xFF800000> : vector<128xf32>
    %18 = vector.multi_reduction <maximumf>, %17, %cst_12 [0] : vector<16x128xf32> to vector<128xf32>
    %19 = vector.shape_cast %18 : vector<128xf32> to vector<1x128xf32>
    %20 = tpu.iota {dimensions = array<i32: 0>} : vector<16x128xi32>
    %21 = vector.broadcast %19 : vector<1x128xf32> to vector<16x128xf32>
    %22 = arith.cmpf oeq, %17, %21 : vector<16x128xf32>
    %c16_i32 = arith.constant 16 : i32
    %23 = vector.broadcast %c16_i32 : i32 to vector<16x128xi32>
    %24 = arith.select %22, %20, %23 : vector<16x128xi1>, vector<16x128xi32>
    %cst_13 = arith.constant dense<2147483647> : vector<128xi32>
    %25 = vector.multi_reduction <minsi>, %24, %cst_13 [0] : vector<16x128xi32> to vector<128xi32>
    %26 = vector.shape_cast %25 : vector<128xi32> to vector<1x128xi32>
    %c0_14 = arith.constant 0 : index
    %c0_15 = arith.constant 0 : index
    %27 = vector.load %arg3[%c0_14, %c0_15] : memref<1x128xi32, #tpu.memory_space<vmem>>, vector<1x128xi32>
    tpu.vector_store %arg3[%c0_14, %c0_15], %26 {strides = array<i32>} : memref<1x128xi32, #tpu.memory_space<vmem>>, vector<1x128xi32>,
    return
  }
  func.func @transform_0(%arg0: i32) -> (i32, i32) {
    %c0_i32 = arith.constant 0 : i32
    %c0_i32_0 = arith.constant 0 : i32
    return %c0_i32, %arg0 : i32, i32
  }
  func.func @transform_1(%arg0: i32) -> (i32, i32) {
    %c0_i32 = arith.constant 0 : i32
    %c0_i32_0 = arith.constant 0 : i32
    %c0_i32_1 = arith.constant 0 : i32
    return %c0_i32, %c0_i32_0 : i32, i32
  }
  func.func @transform_2(%arg0: i32) -> (i32, i32) {
    %c0_i32 = arith.constant 0 : i32
    %c0_i32_0 = arith.constant 0 : i32
    return %c0_i32, %arg0 : i32, i32
  }
}

</mosaic_0001>

<bundles_post_ra>
// kernel: tpu_custom_call.1
= control target key start
LH: loop header
LB: loop body
LE: loop exit
PB: predicated region body
PF: predicated region fallthrough
CT: control target
= control target key end

     0   :  { %7 = vsyncpa [#allocation4], 0  ;;  %s910_s0 = inlined_call_operand.vmem [shape: bf16[32,512], index: 0, kind: input, shape index: {}]   ;;  %s911_s1 = inlined_call_operand.vmem [shape: bf16[112,64], index: 1, kind: input, shape index: {}]   ;;  %s912_s2 = inlined_call_operand.hbm [shape: s32[1,512], index: 2, kind: output, shape index: {}]  }
   0x1   :  { %9 = vsyncpa [#allocation4 + $0x1], 0  ;;  %s783_s9 = smov 0   ;;  %s785_s10 = smov 0  }
   0x2   :  { %s787_s11 = smov 0   ;;  %s789_s12 = smov 0  }
   0x3 LB: > { %s569_s13 = sadd.s32 4294967295, %s762_s12   ;;  %s570_s14 = sadd.s32 4294967294, %s762_s12   ;;  %s762_s12 = sphi %s789_s12, %s918_s12   ;;  %s758_s11 = sphi %s787_s11, %s917_s11   ;;  %s754_s10 = sphi %s785_s10, %s916_s10   ;;  %s750_s9 = sphi %s783_s9, %s915_s9  }
   0x4   : > { %s806_s15 = sadd.s32 1, %s762_s12   ;;  %s22_s16 = sadd.s32 1, %s758_s11 }
   0x5   : > { %s19_s17 = ssub.s32 %s762_s12, %s806_s15  ;;  %p29_p0 = scmp.ne.s32.totalorder %s758_s11, %s754_s10 }
   0x6   : > { %p20_p1 = scmp.eq.s32.totalorder %s19_s17, 0  ;;  %p30_p2 = scmp.eq.s32.totalorder %s762_s12, 0 }
   0x7   : > { %p80_p3 = scmp.eq.s32.totalorder %s569_s13, 3  ;;  %p85_p4 = scmp.ne.s32.totalorder %s754_s10, %s750_s9 }
   0x8   : > { %s819_s18 = scalar_select %p20_p1, %s758_s11, %s22_s16  }
   0x9   : > { %p31_p5 = por %p30_p2, %p29_p0  ;;  %p821_p6 = por %p80_p3, %p29_p0 }
   0xa   : > { %p86_p7 = scmp.eq.s32.totalorder %s570_s14, 3  ;;  %p572_p9 = scmp.ge.s32.totalorder %s762_s12, 4 }
   0xc   : > { %p825_p8 = por %p86_p7, %p85_p4  ;;  %105 = sbr.rel (%p572_p9) target bundleno = 24 (0x18), region = 20 }
  0x11   : > { %108 = sbr.rel (!%p31_p5) target bundleno = 24 (0x18), region = 24  ;;  %s110_s21 = sand.u32 (%p31_p5), 1, %s758_s11  }
  0x12   : > { %s574_s22 = sshll.u32 (%p31_p5), %s762_s12, 2  ;;  %s573_s23 = sshll.u32 (%p31_p5), %s110_s21, 4 }
  0x13   : > { %s114_s26 = scalar_lea.vmem (%p31_p5), %s910_s0, %s574_s22  ;;  %s112_s27 = scalar_lea.vmem (%p31_p5), [#allocation2], %s573_s23 }
  0x14   : > { %v131_v0 = vld [vmem:[%s114_s26] sm:$0xf] (%p31_p5)  ;;  %v133_v1 = vld [vmem:[%s114_s26 + $0x10] sm:$0xf] (%p31_p5) }
  0x15   : > { %132 = vst [vmem:[%s112_s27] sm:$0xf] (%p31_p5), %v131_v0  ;;  %134 = vst [vmem:[%s112_s27 + $0x4] sm:$0xf] (%p31_p5), %v133_v1  ;;  %v135_v2 = vld [vmem:[%s114_s26 + $0x20] sm:$0xf] (%p31_p5) }
  0x16   : > { %v137_v3 = vld [vmem:[%s114_s26 + $0x30] sm:$0xf]  ;;  %136 = vst [vmem:[%s112_s27 + $0x8] sm:$0xf] %v135_v2 }
  0x17   : > { %138 = vst [vmem:[%s112_s27 + $0xc] sm:$0xf] %v137_v3 }
  0x18 PF: > { %p575_p10 = scmp.ge.s32.totalorder %s762_s12, 1  ;;  %p169_p11 = scmp.lt.s32.totalorder %s762_s12, 5 }
  0x1a   : > { %p170_p12 = pnand %p575_p10, %p169_p11 }
  0x1b   : > { %s838_s28 = sand.u32 (!%p170_p12), 1, %s754_s10   ;;  %s601_s26 = sshll.u32 (!%p170_p12), %s569_s13, 4 }
  0x1c   : > { %173 = sbr.rel (%p170_p12) target bundleno = 717 (0x2cd), region = 65  ;;  %s576_s3 = sshll.u32 (!%p170_p12), %s838_s28, 4 }
  0x1d   : > { %s178_s4 = scalar_lea.vmem (!%p170_p12), [#allocation2], %s576_s3  ;;  %s195_s27 = scalar_lea.vmem (!%p170_p12), [#allocation3], %s838_s28 }
  0x1e   : > { %s509_s29 = sshll.u32 (!%p170_p12), %s195_s27, 4  ;;  %s497_s5 = scalar_lea.sflag (!%p170_p12), [#allocation4], %s838_s28  ;;  %s510_s29 = int_to_ptr.vmem [resolvable:$true] %s509_s29 }
  0x1f   : > { %s702_s6 = scalar_lea.vmem (!%p170_p12), %s510_s29, 16  ;;  %s767_s7 = smov (!%p170_p12), [#allocation3]  }
  0x20   : > { %p703_p13 = scmp.ne.s32.totalorder (!%p170_p12), %s510_s29, %s702_s6  ;;  %s706_s13 = sshll.u32 (!%p170_p12), %s767_s7, 4  ;;  %s707_s13 = int_to_ptr.vmem [resolvable:$false] %s706_s13 }
  0x21   : > { %v695_v4 = vld [vmem:[%s911_s1] sm:$0xff]   ;;  %vm237_vm0 = vcmask 261120   ;;  %v693_v5 = vld [vmem:[%s178_s4 + $0x8] sm:$0xff]   ;;  %v697_v8 = vld [vmem:[%s911_s1 + $0x10] sm:$0xff]   ;;  %v764_v12 = vmov -1.0   ;;  %v765_v23 = vmov 0.0   ;;  %v477_v59 = vlaneseq  ;;  %p709_p2 = scmp.lt.s32.totalorder %s510_s29, %s707_s13 }
  0x22   : > { %623 = vmatprep.mubr.msk.bf16.mxu0 %vm237_vm0, %v695_v4  ;;  %v694_v6 = vld [vmem:[%s178_s4] sm:$0xff]   ;;  %619 = vmatprep.subr.bf16.mxu0 %v693_v5  ;;  %v696_v7 = vld [vmem:[%s911_s1 + $0x8] sm:$0xff]   ;;  %v698_v20 = vld [vmem:[%s911_s1 + $0x18] sm:$0xff]   ;;  %vm766_vm5 = vmmov 0   ;;  %vm425_vm6 = vcmask 523264   ;;  %s874_s4 = scalar_lea.hbm %s912_s2, %s601_s26  ;;  %p704_p0 = pnand %p703_p13, %p821_p6 }
  0x23   : > { %620 = vmatpush3.bf16.msra.mxu0 %v693_v5  ;;  %631 = vmatprep.mubr.msk.bf16.mxu1 %vm237_vm0, %v697_v8  ;;  %v699_v21 = vld [vmem:[%s911_s1 + $0x20] sm:$0xff]   ;;  %v700_v22 = vld [vmem:[%s911_s1 + $0x28] sm:$0xff]   ;;  %v701_v52 = vld [vmem:[%s911_s1 + $0x30] sm:$0xff]   ;;  %v478_v62 = vshrl.u32 %v477_v59, 7  ;;  %s708_s8 = scalar_lea.vmem %s707_s13, 32 }
  0x24   : > { %621 = vmatprep.subr.bf16.mxu0 %v694_v6  ;;  %p705_p1 = pneg %p704_p0  ;;  %p710_p3 = scmp.lt.s32.totalorder %s708_s8, %s702_s6 }
  0x25   : > { %v479_v1 = vadd.s32 8, %v478_v62 }
  0x26   : > { %p711_p4 = por %p710_p3, %p709_p2 }
  0x27   : > { %622 = vmatpush3.bf16.msra.mxu0 %v694_v6 }
  0x28   : > { %639 = vmatprep.subr.bf16.mxu0 %v765_v23  ;;  %p712_p5 = pnand %p711_p4, %p705_p1 }
  0x2a   : > { %624 = vmatmul.mubr.msk.bf16.vlgmr.msra.gmra.mxu0 %vm237_vm0, %v696_v7 }
  0x2b   : > { %647 = vmatprep.mubr.msk.bf16.mxu0 %vm766_vm5, %v765_v23 }
  0xea   : > { %v625_v9 = vpop.f32.mrf.mxu0 }
  0xeb   : > { %vm295_vm1 = vcmp.gt.f32.partialorder %v625_v9, 0.0 }
  0xec   : > { %v278_v10 = vpop.f32.mrf.mxu0  ;;  %v299_v13 = vsel %vm295_vm1, 1.0, %v764_v12 }
  0xed   : > { %vm293_vm2 = vcmp.gt.f32.partialorder %v278_v10, 0.0 }
  0xee   : > { %v626_v11 = vpop.f32.mrf.mxu0  ;;  %v297_v17 = vsel %vm293_vm2, 1.0, %v764_v12 }
  0xef   : > { %vm296_vm3 = vcmp.gt.f32.partialorder %v626_v11, 0.0 }
  0xf0   : > { %v300_v14 = vsel %vm296_vm3, 1.0, %v764_v12  ;;  %v281_v15 = vpop.f32.mrf.mxu0 }
  0xf1   : > { %vm294_vm4 = vcmp.gt.f32.partialorder %v281_v15, 0.0  ;;  %v302_v16 = vpack.c.bf16 %v300_v14, %v299_v13 }
  0xf2   : > { %v298_v18 = vsel %vm294_vm4, 1.0, %v764_v12 }
  0xf3   : > { %v301_v19 = vpack.c.bf16 %v298_v18, %v297_v17  ;;  %627 = vmatprep.subr.bf16.mxu1 %v302_v16 }
  0xf4   : > { %628 = vmatpush3.bf16.msra.mxu1 %v302_v16 }
  0xf5   : > { %629 = vmatprep.subr.bf16.mxu1 %v301_v19 }
  0xf8   : > { %630 = vmatpush3.bf16.msra.mxu1 %v301_v19 }
  0xfb   : > { %632 = vmatmul.mubr.msk.bf16.vlgmr.msra.gmra.mxu1 %vm237_vm0, %v698_v20 }
  0xfc   : > { %635 = vmatprep.mubr.msk.bf16.mxu1 %vm237_vm0, %v699_v21 }
 0x103   : > { %636 = vmatmul.mubr.msk.bf16.gmra.mxu1 %vm237_vm0, %v700_v22 }
 0x1bb   : > { %v633_v24 = vpop.f32.mrf.mxu1 }
 0x1bc   : > { %v593_v41 = vadd.f32 -2.0, %v633_v24 }
 0x1bd   : > { %v369_v25 = vpop.f32.mrf.mxu1 }
 0x1be   : > { %v410_v46 = vmax.f32 %v593_v41, 0.0  ;;  %v591_v47 = vadd.f32 -2.0, %v369_v25 }
 0x1bf   : > { %v634_v26 = vpop.f32.mrf.mxu1 }
 0x1c0   : > { %v594_v38 = vadd.f32 -2.0, %v634_v26  ;;  %v408_v50 = vmax.f32 %v591_v47, 0.0 }
 0x1c1   : > { %v372_v27 = vpop.f32.mrf.mxu1 }
 0x1c2   : > { %v411_v43 = vmax.f32 %v594_v38, 0.0  ;;  %v592_v44 = vadd.f32 -2.0, %v372_v27 }
 0x1c3   : > { %v637_v28 = vpop.f32.mrf.mxu1 }
 0x1c4   : > { %v597_v30 = vadd.f32 -2.0, %v637_v28  ;;  %v417_v48 = vpack.c.bf16 %v411_v43, %v410_v46  ;;  %v409_v49 = vmax.f32 %v592_v44, 0.0 }
 0x1c5   : > { %v385_v29 = vpop.f32.mrf.mxu1 }
 0x1c6   : > { %v414_v34 = vmax.f32 %v597_v30, 0.0  ;;  %v595_v35 = vadd.f32 -2.0, %v385_v29  ;;  %v416_v51 = vpack.c.bf16 %v409_v49, %v408_v50 }
 0x1c7   : > { %v638_v31 = vpop.f32.mrf.mxu1 }
 0x1c8   : > { %v598_v32 = vadd.f32 -2.0, %v638_v31  ;;  %v412_v42 = vmax.f32 %v595_v35, 0.0 }
 0x1c9   : > { %v388_v33 = vpop.f32.mrf.mxu1 }
 0x1ca   : > { %v415_v36 = vmax.f32 %v598_v32, 0.0  ;;  %v596_v37 = vadd.f32 -2.0, %v388_v33 }
 0x1cc   : > { %v419_v39 = vpack.c.bf16 %v415_v36, %v414_v34  ;;  %v413_v40 = vmax.f32 %v596_v37, 0.0 }
 0x1ce   : > { %640 = vmatpush3.bf16.msra.mxu0 %v419_v39  ;;  %v418_v45 = vpack.c.bf16 %v413_v40, %v412_v42 }
 0x1cf   : > { %641 = vmatprep.subr.bf16.mxu0 %v765_v23 }
 0x1d2   : > { %642 = vmatpush3.bf16.msra.mxu0 %v418_v45 }
 0x1d3   : > { %643 = vmatprep.subr.bf16.mxu0 %v765_v23 }
 0x1d6   : > { %644 = vmatpush3.bf16.msra.mxu0 %v417_v48 }
 0x1d7   : > { %645 = vmatprep.subr.bf16.mxu0 %v765_v23 }
 0x1da   : > { %646 = vmatpush3.bf16.msra.mxu0 %v416_v51 }
 0x1dd   : > { %648 = vmatmul.mubr.msk.bf16.vlgmr.msra.gmra.mxu0 %vm425_vm6, %v701_v52 }
 0x29d   : > { %v463_v53 = vpop.f32.mrf.mxu0 }
 0x29f   : > { %v649_v54 = vpop.f32.mrf.mxu0 }
 0x2a1   : > { %v466_v55 = vpop.f32.mrf.mxu0 }
 0x2a2   : > { %v470_v56 = vmax.f32 %v463_v53, %v466_v55 }
 0x2a3   : > { %v650_v57 = vpop.f32.mrf.mxu0 }
 0x2a4   : > { %v471_v58 = vrot.slane %v470_v56, 4 }
 0x2a6   : > { %v472_v60 = vmax.f32 %v470_v56, %v471_v58 }
 0x2a8   : > { %v473_v61 = vrot.slane %v472_v60, 2 }
 0x2aa   : > { %v474_v63 = vmax.f32 %v472_v60, %v473_v61 }
 0x2ac   : > { %v475_v0 = vrot.slane %v474_v63, 1 }
 0x2ae   : > { %v476_v2 = vmax.f32 %v474_v63, %v475_v0 }
 0x2b0   : > { %vm480_vm7 = vcmp.eq.f32.partialorder %v463_v53, %v476_v2  ;;  %vm481_vm8 = vcmp.eq.f32.partialorder %v466_v55, %v476_v2 }
 0x2b1   : > { %v482_v3 = vsel %vm480_vm7, %v478_v62, 16  ;;  %v483_v4 = vsel %vm481_vm8, %v479_v1, 16 }
 0x2b2   : > { %vm484_vm9 = vcmp.lt.s32.totalorder %v482_v3, %v483_v4 }
 0x2b3   : > { %v485_v5 = vsel %vm484_vm9, %v482_v3, %v483_v4 }
 0x2b4   : > { %v486_v6 = vrot.slane %v485_v5, 4 }
 0x2b6   : > { %vm487_vm10 = vcmp.lt.s32.totalorder %v485_v5, %v486_v6 }
 0x2b7   : > { %v488_v7 = vsel %vm487_vm10, %v485_v5, %v486_v6 }
 0x2b8   : > { %v489_v8 = vrot.slane %v488_v7, 2 }
 0x2ba   : > { %vm490_vm11 = vcmp.lt.s32.totalorder %v488_v7, %v489_v8 }
 0x2bb   : > { %v491_v9 = vsel %vm490_vm11, %v488_v7, %v489_v8 }
 0x2bc   : > { %v492_v10 = vrot.slane %v491_v9, 1 }
 0x2be   : > { %vm493_vm12 = vcmp.lt.s32.totalorder %v491_v9, %v492_v10 }
 0x2bf   : > { %v494_v11 = vsel %vm493_vm12, %v491_v9, %v492_v10 }
 0x2c0   : > { %495 = vst [vmem:[%s195_s27] sm:$0x1] %v494_v11 }
 0x2c1   : > { %715 = shalt.err (!%p712_p5)
}
 0x2c2   : > { %s716_s14 = scalar_lea.hbm %s874_s4, 16  ;;  %s720_s17 = scalar_lea.hbm %s912_s2, 64 }
 0x2c3   : > { %p717_p7 = scmp.ne.s32.totalorder %s874_s4, %s716_s14  ;;  %p721_p11 = scmp.lt.s32.totalorder %s874_s4, %s912_s2 }
 0x2c4   : > { %p722_p12 = scmp.lt.s32.totalorder %s720_s17, %s716_s14 }
 0x2c5   : > { %p718_p9 = pnand %p717_p7, %p821_p6 }
 0x2c6   : > { %p723_p13 = por %p722_p12, %p721_p11 }
 0x2c7   : > { %p719_p10 = pneg %p718_p9 }
 0x2c9   : > { %p724_p0 = pnand %p723_p13, %p719_p10 }
 0x2cb   : > { %727 = shalt.err (!%p724_p0)
}
 0x2cc   : > { %651 = dma.vmem_to_hbm [thread:$0]  (%p821_p6), %s510_s29, 16, %s874_s4, %s497_s5  }
 0x2cd PF: > { %p657_p1 = scmp.ge.s32.totalorder %s762_s12, 2  ;;  %s521_s23 = sand.u32 1, %s750_s9  }
 0x2ce   : > { %s522_s24 = scalar_lea.sflag [#allocation4], %s521_s23 }
 0x2cf   : > { %p654_p2 = pnand %p657_p1, %p825_p8 }
 0x2d1   : > { %p655_p3 = pneg %p654_p2 }
 0x2d3   : > { %745 = dma.done.wait (%p655_p3), %s522_s24, 16  }
 0x2d4   : > { %747 = vsyncadd (%p655_p3), %s522_s24, 4294967280  ;;  %p12_p4 = scmp.ge.s32.totalorder %s806_s15, 6   ;;  %s915_s9 = smov %s754_s10 }
 0x2d5   : > { %s916_s10 = smov %s758_s11  ;;  %s917_s11 = smov %s819_s18 }
 0x2d6   : > { %s918_s12 = smov %s806_s15  ;;  %14 = sbr.rel (!%p12_p4) target bundleno = 3 (0x3), region = 109 }
 0x2db   :  { %526 = vsyncpa [#allocation4], 1 }
 0x2dc   :  { %528 = vsyncpa [#allocation4 + $0x1], 1 }

</bundles_post_ra>
